<compile_context>
chip_gen: v5e
topology: v5e:2x2
jax: 0.10.0
libtpu: 0.0.40
codegen_flags: <defaults>
</compile_context>

<pallas_src>
import math
from functools import partial

import jax
import jax.numpy as jnp
from jax import lax
from jax.experimental import pallas as pl
from jax.experimental.pallas import tpu as pltpu
from jax.scipy.special import gammaln  # reference only (not used inside the kernel)

EPS = 1e-6
LANE = 128
GROUP_ROWS = 64            # rows per fused-reduction step (8 f32 vregs per input)
MAX_BLOCK_ROWS = 1024      # reduction path: 1024 x 128 f32 = 512 KiB per input block
MAX_BLOCK_ROWS_NONE = 512  # elementwise path materializes the full tile -> keep smaller

# ---------------------------------------------------------------------------
# Lanczos log-gamma (g = 7, 9 coefficients) as a rational function.
#   c0 + sum_{k=1..8} c_k / (x + k - 1)  ==  N(x) / D(x),  D(x) = prod_{j=0..7}(x + j)
# Valid for x > 0 (all arguments of this loss). Coefficients of N and D are all
# positive, so f32 Horner evaluation at x >= 0 is cancellation-free.
# Note: D(x) ~ x^8 overflows f32 for x > ~6e4; counts that large lose f32 lgamma
# precision anyway.
# ---------------------------------------------------------------------------
_LANCZOS_G = 7.0
_LANCZOS_COEFS = (
    0.99999999999980993,
    676.5203681218851,
    -1259.1392167224028,
    771.32342877765313,
    -176.61502916214059,
    12.507343278686905,
    -0.13857109526572012,
    9.9843695780195716e-6,
    1.5056327351493116e-7,
)
_HALF_LOG_TWO_PI = 0.5 * math.log(2.0 * math.pi)


def _poly_mul(p, q):
    out = [0.0] * (len(p) + len(q) - 1)
    for i, a in enumerate(p):
        for j, b in enumerate(q):
            out[i + j] += a * b
    return out


def _lanczos_rational():
    """Numerator/denominator coefficients (highest degree first), float64 exact."""
    den = [1.0]
    for j in range(8):
        den = _poly_mul(den, [1.0, float(j)])                    # (x + j)
    num = [_LANCZOS_COEFS[0] * v for v in den]
    for k in range(1, 9):
        part = [1.0]
        for j in range(8):
            if j != k - 1:
                part = _poly_mul(part, [1.0, float(j)])
        part = [_LANCZOS_COEFS[k] * v for v in part]
        part = [0.0] * (len(num) - len(part)) + part
        num = [a + b for a, b in zip(num, part)]
    return tuple(num), tuple(den)


_LANCZOS_NUM, _LANCZOS_DEN = _lanczos_rational()


def _horner(x, coefs):
    acc = x * coefs[0] + coefs[1]
    for c in coefs[2:]:
        acc = acc * x + c
    return acc


def _lanczos_a(x):
    """A(x) = c0 + sum_k c_k/(x+k-1) for x > 0, with a single divide."""
    return _horner(x, _LANCZOS_NUM) / _horner(x, _LANCZOS_DEN)


def _negll(mu, sigma, y, eps):
    """Point-wise NB negative log-likelihood; matches the torch forward."""
    sigma2 = sigma * sigma + 2.0 * eps
    scaled = mu / sigma2 + eps
    ratio = (mu * mu) / (sigma2 - mu) + eps

    a = y + ratio        # + lgamma(a)
    b = y + 1.0          # - lgamma(b)
    c = ratio            # - lgamma(c)

    t_a = a + (_LANCZOS_G - 0.5)
    t_b = b + (_LANCZOS_G - 0.5)
    t_c = c + (_LANCZOS_G - 0.5)

    # lgamma(a) - lgamma(b) - lgamma(c):
    #   the three -t/+t terms collapse to the constant (g + 0.5) and the three
    #   Lanczos series are folded into one log of a quotient (each A_i is O(1..1e9),
    #   so the quotient never over/underflows in f32).
    lgamma_comb = (
        (a - 0.5) * jnp.log(t_a)
        - (b - 0.5) * jnp.log(t_b)
        - (c - 0.5) * jnp.log(t_c)
        + (_LANCZOS_G + 0.5 - _HALF_LOG_TWO_PI)
        + jnp.log(_lanczos_a(a) / (_lanczos_a(b) * _lanczos_a(c)))
    )
    return -(lgamma_comb + y * jnp.log(1.0 - scaled) + ratio * jnp.log(scaled))


# ---------------------------------------------------------------------------
# Kernels
# ---------------------------------------------------------------------------
def _elementwise_kernel(mu_ref, sigma_ref, y_ref, out_ref, *, eps):
    out_ref[...] = _negll(mu_ref[...].astype(jnp.float32),
                          sigma_ref[...].astype(jnp.float32),
                          y_ref[...].astype(jnp.float32), eps)


def _tree_fold_rows(v, rows):
    """Fold (rows, 128) -> (8, 128) with a pairwise tree of VPU adds."""
    parts = [v[8 * j:8 * (j + 1), :] for j in range(rows // 8)]
    while len(parts) > 1:
        half = len(parts) // 2
        merged = [parts[i] + parts[half + i] for i in range(half)]
        if len(parts) % 2:
            merged.append(parts[-1])
        parts = merged
    return parts[0]


def _partial_sum_kernel(mu_ref, sigma_ref, y_ref, out_ref, *, eps, block_rows,
                        group_rows, tail_valid):
    """Each grid step writes an (8, 128) tile of partial sums for its block."""
    n_groups = block_rows // group_rows

    def group_sum(j, mask_tail):
        r0 = pl.multiple_of(j * group_rows, group_rows)
        negll = _negll(mu_ref[pl.ds(r0, group_rows), :].astype(jnp.float32),
                       sigma_ref[pl.ds(r0, group_rows), :].astype(jnp.float32),
                       y_ref[pl.ds(r0, group_rows), :].astype(jnp.float32), eps)
        if mask_tail:
            # Mask lane-padding and row-overhang elements of the last block.
            lin = (lax.broadcasted_iota(jnp.int32, (group_rows, LANE), 0) * LANE
                   + lax.broadcasted_iota(jnp.int32, (group_rows, LANE), 1)
                   + r0 * LANE)
            negll = jnp.where(lin < tail_valid, negll, 0.0)
        return _tree_fold_rows(negll, group_rows)

    def run(mask_tail):
        zero = jnp.zeros((8, LANE), jnp.float32)
        return lax.fori_loop(0, n_groups,
                             lambda j, acc: acc + group_sum(j, mask_tail), zero)

    if tail_valid == block_rows * LANE:
        # Every block (including the last) is fully valid: no masking anywhere.
        out_ref[...] = run(False)
    else:
        last = pl.num_programs(0) - 1

        @pl.when(pl.program_id(0) < last)
        def _():
            out_ref[...] = run(False)

        @pl.when(pl.program_id(0) == last)
        def _():
            out_ref[...] = run(True)


# ---------------------------------------------------------------------------
# Wrapper
# ---------------------------------------------------------------------------
def _round_up(x, m):
    return ((x + m - 1) // m) * m


def negative_binomial_loss(mu, sigma, y_true, reduction="mean", eps=EPS):
    """Pallas implementation of swak.pt.losses.NegativeBinomialLoss.forward."""
    if reduction not in ("mean", "sum", "none"):
        raise ValueError('"reduction" must be one of "mean", "sum", or "none"!')

    shape = jnp.shape(mu)
    n = math.prod(shape) if shape else 1
    rows = pl.cdiv(n, LANE)
    lane_padded = rows * LANE

    # Block sizing: big blocks to amortize per-step overhead, but always try to
    # produce >= 2 blocks so both v7x TensorCores get work via the parallel grid.
    max_rows = MAX_BLOCK_ROWS if reduction != "none" else MAX_BLOCK_ROWS_NONE
    if rows >= 2 * max_rows:
        block_rows = max_rows
    elif rows > 2 * GROUP_ROWS:
        block_rows = _round_up(pl.cdiv(rows, 2), GROUP_ROWS)
    else:
        block_rows = _round_up(max(pl.cdiv(rows, 2), 8), 8)
    group_rows = min(block_rows, GROUP_ROWS)
    num_blocks = pl.cdiv(rows, block_rows)

    def flatten(x):
        # Keep the native dtype (cast to f32 inside the kernel). Only pay a pad
        # copy when n is not a multiple of the lane width; rows are NOT padded
        # to a block multiple (the last block overhangs and is masked in-kernel).
        x = jnp.asarray(x).reshape(-1)
        if lane_padded != n:
            x = jnp.pad(x, (0, lane_padded - n))
        return x.reshape(rows, LANE)

    muf, sf, yf = flatten(mu), flatten(sigma), flatten(y_true)

    tile_spec = pl.BlockSpec((block_rows, LANE), lambda i: (i, 0))
    params = pltpu.CompilerParams(dimension_semantics=("parallel",))

    if reduction == "none":
        out = pl.pallas_call(
            partial(_elementwise_kernel, eps=eps),
            out_shape=jax.ShapeDtypeStruct((rows, LANE), jnp.float32),
            grid=(num_blocks,),
            in_specs=[tile_spec, tile_spec, tile_spec],
            out_specs=tile_spec,
            compiler_params=params,
        )(muf, sf, yf)
        return out.reshape(-1)[:n].reshape(shape)

    # 'mean' / 'sum': hierarchical reduction — per-block (8, 128) partial sums
    # (fused with the elementwise compute), finished with a tiny jnp.sum.
    tail_valid = n - (num_blocks - 1) * block_rows * LANE
    partials = pl.pallas_call(
        partial(_partial_sum_kernel, eps=eps, block_rows=block_rows,
                group_rows=group_rows, tail_valid=tail_valid),
        out_shape=jax.ShapeDtypeStruct((num_blocks * 8, LANE), jnp.float32),
        grid=(num_blocks,),
        in_specs=[tile_spec, tile_spec, tile_spec],
        out_specs=pl.BlockSpec((8, LANE), lambda i: (i, 0)),
        compiler_params=params,
    )(muf, sf, yf)

    total = jnp.sum(partials)
    return total / n if reduction == "mean" else total


# ---------------------------------------------------------------------------
# Pure-JAX reference (uses jax.scipy.special.gammaln, like torch.special.gammaln)
# ---------------------------------------------------------------------------
def _reference(mu, sigma, y_true, reduction="mean", eps=EPS):
    mu = mu.astype(jnp.float32)
    sigma = sigma.astype(jnp.float32)
    y = y_true.astype(jnp.float32)
    sigma2 = sigma ** 2 + 2.0 * eps
    scaled = mu / sigma2 + eps
    ratio = mu ** 2 / (sigma2 - mu) + eps
    negll = -(
        gammaln(y + ratio)
        + y * jnp.log(1.0 - scaled)
        + ratio * jnp.log(scaled)
        - gammaln(y + 1.0)
        - gammaln(ratio)
    )
    if reduction == "mean":
        return jnp.mean(negll)
    if reduction == "sum":
        return jnp.sum(negll)
    return negll


if __name__ == "__main__":
    key = jax.random.PRNGKey(0)
    k_mu, k_s, k_y, k_zero = jax.random.split(key, 4)

    shape = (2, 4, 16, 16)  # NCHW-style demo shape

    # mu >= 0 (predicted means); sigma chosen so sigma**2 is comfortably above mu
    # (the only regime in which this NB parameterization is valid); y_true are
    # zero-inflated non-negative counts.
    mu = jnp.abs(jax.random.normal(k_mu, shape, dtype=jnp.float32)) * 2.0
    sigma = jnp.sqrt(1.5 * mu + 1.0
                     + jax.random.uniform(k_s, shape, dtype=jnp.float32))
    y = jnp.floor(jnp.abs(jax.random.normal(k_y, shape, dtype=jnp.float32)) * 3.0)
    y = jnp.where(jax.random.uniform(k_zero, shape) < 0.4, 0.0, y)

    out_mean = jax.block_until_ready(negative_binomial_loss(mu, sigma, y, "mean"))
    out_sum = jax.block_until_ready(negative_binomial_loss(mu, sigma, y, "sum"))
    out_none = jax.block_until_ready(negative_binomial_loss(mu, sigma, y, "none"))

    ref_mean = _reference(mu, sigma, y, "mean")
    ref_sum = _reference(mu, sigma, y, "sum")
    ref_none = _reference(mu, sigma, y, "none")

    assert out_none.shape == shape
    # Tolerances account for the in-kernel rational-Lanczos lgamma vs XLA's
    # gammaln in f32 (observed differences are ~1e-5 level).
    assert jnp.allclose(out_mean, ref_mean, rtol=2e-3, atol=2e-3)
    assert jnp.allclose(out_sum, ref_sum, rtol=2e-3, atol=2e-2)
    assert jnp.allclose(out_none, ref_none, rtol=2e-3, atol=2e-3)

    print("KERNEL_OK")
</pallas_src>

<mosaic_0001>
module attributes {stable_mosaic.version = 11 : i64} {
  func.func @_partial_sum_kernel(%arg0: i32, %arg1: memref<8x128xf32, #tpu.memory_space<vmem>>, %arg2: memref<8x128xf32, #tpu.memory_space<vmem>>, %arg3: memref<8x128xf32, #tpu.memory_space<vmem>>, %arg4: memref<8x128xf32, #tpu.memory_space<vmem>>) attributes {dimension_semantics = [#tpu.dimension_semantics<parallel>], iteration_bounds = array<i64: 2>, scalar_prefetch = 0 : i64, scratch_operands = 0 : i64, tpu.core_type = #tpu.core_type<tc>, window_params = [{transform_indices = @transform_0, window_bounds = array<i64: 8, 128>}, {transform_indices = @transform_1, window_bounds = array<i64: 8, 128>}, {transform_indices = @transform_2, window_bounds = array<i64: 8, 128>}, {transform_indices = @transform_3, window_bounds = array<i64: 8, 128>}]} {
    %cst = arith.constant 0.000000e+00 : f32
    %0 = vector.broadcast %cst : f32 to vector<8x128xf32>
    %c0_i32 = arith.constant 0 : i32
    %c8_i32 = arith.constant 8 : i32
    %1 = arith.muli %c0_i32, %c8_i32 : i32
    %2 = tpu.assume_multiple %1, 8 : i32
    %3 = arith.index_cast %2 : i32 to index
    %c0 = arith.constant 0 : index
    %4 = vector.load %arg1[%3, %c0] : memref<8x128xf32, #tpu.memory_space<vmem>>, vector<8x128xf32>
    %5 = arith.index_cast %2 : i32 to index
    %c0_0 = arith.constant 0 : index
    %6 = vector.load %arg2[%5, %c0_0] : memref<8x128xf32, #tpu.memory_space<vmem>>, vector<8x128xf32>
    %7 = arith.index_cast %2 : i32 to index
    %c0_1 = arith.constant 0 : index
    %8 = vector.load %arg3[%7, %c0_1] : memref<8x128xf32, #tpu.memory_space<vmem>>, vector<8x128xf32>
    %9 = arith.mulf %6, %6 : vector<8x128xf32>
    %cst_2 = arith.constant 2.000000e-06 : f32
    %10 = vector.broadcast %cst_2 : f32 to vector<8x128xf32>
    %11 = arith.addf %9, %10 : vector<8x128xf32>
    %12 = arith.divf %4, %11 : vector<8x128xf32>
    %cst_3 = arith.constant 9.99999997E-7 : f32
    %13 = vector.broadcast %cst_3 : f32 to vector<8x128xf32>
    %14 = arith.addf %12, %13 : vector<8x128xf32>
    %15 = arith.mulf %4, %4 : vector<8x128xf32>
    %16 = arith.subf %11, %4 : vector<8x128xf32>
    %17 = arith.divf %15, %16 : vector<8x128xf32>
    %cst_4 = arith.constant 9.99999997E-7 : f32
    %18 = vector.broadcast %cst_4 : f32 to vector<8x128xf32>
    %19 = arith.addf %17, %18 : vector<8x128xf32>
    %20 = arith.addf %8, %19 : vector<8x128xf32>
    %cst_5 = arith.constant 1.000000e+00 : f32
    %21 = vector.broadcast %cst_5 : f32 to vector<8x128xf32>
    %22 = arith.addf %8, %21 : vector<8x128xf32>
    %cst_6 = arith.constant 6.500000e+00 : f32
    %23 = vector.broadcast %cst_6 : f32 to vector<8x128xf32>
    %24 = arith.addf %20, %23 : vector<8x128xf32>
    %cst_7 = arith.constant 6.500000e+00 : f32
    %25 = vector.broadcast %cst_7 : f32 to vector<8x128xf32>
    %26 = arith.addf %22, %25 : vector<8x128xf32>
    %cst_8 = arith.constant 6.500000e+00 : f32
    %27 = vector.broadcast %cst_8 : f32 to vector<8x128xf32>
    %28 = arith.addf %19, %27 : vector<8x128xf32>
    %cst_9 = arith.constant 5.000000e-01 : f32
    %29 = vector.broadcast %cst_9 : f32 to vector<8x128xf32>
    %30 = arith.subf %20, %29 : vector<8x128xf32>
    %31 = math.log %24 : vector<8x128xf32>
    %32 = arith.mulf %30, %31 : vector<8x128xf32>
    %cst_10 = arith.constant 5.000000e-01 : f32
    %33 = vector.broadcast %cst_10 : f32 to vector<8x128xf32>
    %34 = arith.subf %22, %33 : vector<8x128xf32>
    %35 = math.log %26 : vector<8x128xf32>
    %36 = arith.mulf %34, %35 : vector<8x128xf32>
    %37 = arith.subf %32, %36 : vector<8x128xf32>
    %cst_11 = arith.constant 5.000000e-01 : f32
    %38 = vector.broadcast %cst_11 : f32 to vector<8x128xf32>
    %39 = arith.subf %19, %38 : vector<8x128xf32>
    %40 = math.log %28 : vector<8x128xf32>
    %41 = arith.mulf %39, %40 : vector<8x128xf32>
    %42 = arith.subf %37, %41 : vector<8x128xf32>
    %cst_12 = arith.constant 6.58106136 : f32
    %43 = vector.broadcast %cst_12 : f32 to vector<8x128xf32>
    %44 = arith.addf %42, %43 : vector<8x128xf32>
    %cst_13 = arith.constant 1.000000e+00 : f32
    %45 = vector.broadcast %cst_13 : f32 to vector<8x128xf32>
    %46 = arith.mulf %20, %45 : vector<8x128xf32>
    %cst_14 = arith.constant 52.4583321 : f32
    %47 = vector.broadcast %cst_14 : f32 to vector<8x128xf32>
    %48 = arith.addf %46, %47 : vector<8x128xf32>
    %49 = arith.mulf %48, %20 : vector<8x128xf32>
    %cst_15 = arith.constant 1203.83423 : f32
    %50 = vector.broadcast %cst_15 : f32 to vector<8x128xf32>
    %51 = arith.addf %49, %50 : vector<8x128xf32>
    %52 = arith.mulf %51, %20 : vector<8x128xf32>
    %cst_16 = arith.constant 15784.8809 : f32
    %53 = vector.broadcast %cst_16 : f32 to vector<8x128xf32>
    %54 = arith.addf %52, %53 : vector<8x128xf32>
    %55 = arith.mulf %54, %20 : vector<8x128xf32>
    %cst_17 = arith.constant 129347.258 : f32
    %56 = vector.broadcast %cst_17 : f32 to vector<8x128xf32>
    %57 = arith.addf %55, %56 : vector<8x128xf32>
    %58 = arith.mulf %57, %20 : vector<8x128xf32>
    %cst_18 = arith.constant 678289.688 : f32
    %59 = vector.broadcast %cst_18 : f32 to vector<8x128xf32>
    %60 = arith.addf %58, %59 : vector<8x128xf32>
    %61 = arith.mulf %60, %20 : vector<8x128xf32>
    %cst_19 = arith.constant 2222880.5 : f32
    %62 = vector.broadcast %cst_19 : f32 to vector<8x128xf32>
    %63 = arith.addf %61, %62 : vector<8x128xf32>
    %64 = arith.mulf %63, %20 : vector<8x128xf32>
    %cst_20 = arith.constant 0x4A7E0D50 : f32
    %65 = vector.broadcast %cst_20 : f32 to vector<8x128xf32>
    %66 = arith.addf %64, %65 : vector<8x128xf32>
    %67 = arith.mulf %66, %20 : vector<8x128xf32>
    %cst_21 = arith.constant 3409662.75 : f32
    %68 = vector.broadcast %cst_21 : f32 to vector<8x128xf32>
    %69 = arith.addf %67, %68 : vector<8x128xf32>
    %cst_22 = arith.constant 1.000000e+00 : f32
    %70 = vector.broadcast %cst_22 : f32 to vector<8x128xf32>
    %71 = arith.mulf %20, %70 : vector<8x128xf32>
    %cst_23 = arith.constant 2.800000e+01 : f32
    %72 = vector.broadcast %cst_23 : f32 to vector<8x128xf32>
    %73 = arith.addf %71, %72 : vector<8x128xf32>
    %74 = arith.mulf %73, %20 : vector<8x128xf32>
    %cst_24 = arith.constant 3.220000e+02 : f32
    %75 = vector.broadcast %cst_24 : f32 to vector<8x128xf32>
    %76 = arith.addf %74, %75 : vector<8x128xf32>
    %77 = arith.mulf %76, %20 : vector<8x128xf32>
    %cst_25 = arith.constant 1.960000e+03 : f32
    %78 = vector.broadcast %cst_25 : f32 to vector<8x128xf32>
    %79 = arith.addf %77, %78 : vector<8x128xf32>
    %80 = arith.mulf %79, %20 : vector<8x128xf32>
    %cst_26 = arith.constant 6.769000e+03 : f32
    %81 = vector.broadcast %cst_26 : f32 to vector<8x128xf32>
    %82 = arith.addf %80, %81 : vector<8x128xf32>
    %83 = arith.mulf %82, %20 : vector<8x128xf32>
    %cst_27 = arith.constant 1.313200e+04 : f32
    %84 = vector.broadcast %cst_27 : f32 to vector<8x128xf32>
    %85 = arith.addf %83, %84 : vector<8x128xf32>
    %86 = arith.mulf %85, %20 : vector<8x128xf32>
    %cst_28 = arith.constant 1.306800e+04 : f32
    %87 = vector.broadcast %cst_28 : f32 to vector<8x128xf32>
    %88 = arith.addf %86, %87 : vector<8x128xf32>
    %89 = arith.mulf %88, %20 : vector<8x128xf32>
    %cst_29 = arith.constant 5.040000e+03 : f32
    %90 = vector.broadcast %cst_29 : f32 to vector<8x128xf32>
    %91 = arith.addf %89, %90 : vector<8x128xf32>
    %92 = arith.mulf %91, %20 : vector<8x128xf32>
    %cst_30 = arith.constant 0.000000e+00 : f32
    %93 = vector.broadcast %cst_30 : f32 to vector<8x128xf32>
    %94 = arith.addf %92, %93 : vector<8x128xf32>
    %95 = arith.divf %69, %94 : vector<8x128xf32>
    %cst_31 = arith.constant 1.000000e+00 : f32
    %96 = vector.broadcast %cst_31 : f32 to vector<8x128xf32>
    %97 = arith.mulf %22, %96 : vector<8x128xf32>
    %cst_32 = arith.constant 52.4583321 : f32
    %98 = vector.broadcast %cst_32 : f32 to vector<8x128xf32>
    %99 = arith.addf %97, %98 : vector<8x128xf32>
    %100 = arith.mulf %99, %22 : vector<8x128xf32>
    %cst_33 = arith.constant 1203.83423 : f32
    %101 = vector.broadcast %cst_33 : f32 to vector<8x128xf32>
    %102 = arith.addf %100, %101 : vector<8x128xf32>
    %103 = arith.mulf %102, %22 : vector<8x128xf32>
    %cst_34 = arith.constant 15784.8809 : f32
    %104 = vector.broadcast %cst_34 : f32 to vector<8x128xf32>
    %105 = arith.addf %103, %104 : vector<8x128xf32>
    %106 = arith.mulf %105, %22 : vector<8x128xf32>
    %cst_35 = arith.constant 129347.258 : f32
    %107 = vector.broadcast %cst_35 : f32 to vector<8x128xf32>
    %108 = arith.addf %106, %107 : vector<8x128xf32>
    %109 = arith.mulf %108, %22 : vector<8x128xf32>
    %cst_36 = arith.constant 678289.688 : f32
    %110 = vector.broadcast %cst_36 : f32 to vector<8x128xf32>
    %111 = arith.addf %109, %110 : vector<8x128xf32>
    %112 = arith.mulf %111, %22 : vector<8x128xf32>
    %cst_37 = arith.constant 2222880.5 : f32
    %113 = vector.broadcast %cst_37 : f32 to vector<8x128xf32>
    %114 = arith.addf %112, %113 : vector<8x128xf32>
    %115 = arith.mulf %114, %22 : vector<8x128xf32>
    %cst_38 = arith.constant 0x4A7E0D50 : f32
    %116 = vector.broadcast %cst_38 : f32 to vector<8x128xf32>
    %117 = arith.addf %115, %116 : vector<8x128xf32>
    %118 = arith.mulf %117, %22 : vector<8x128xf32>
    %cst_39 = arith.constant 3409662.75 : f32
    %119 = vector.broadcast %cst_39 : f32 to vector<8x128xf32>
    %120 = arith.addf %118, %119 : vector<8x128xf32>
    %cst_40 = arith.constant 1.000000e+00 : f32
    %121 = vector.broadcast %cst_40 : f32 to vector<8x128xf32>
    %122 = arith.mulf %22, %121 : vector<8x128xf32>
    %cst_41 = arith.constant 2.800000e+01 : f32
    %123 = vector.broadcast %cst_41 : f32 to vector<8x128xf32>
    %124 = arith.addf %122, %123 : vector<8x128xf32>
    %125 = arith.mulf %124, %22 : vector<8x128xf32>
    %cst_42 = arith.constant 3.220000e+02 : f32
    %126 = vector.broadcast %cst_42 : f32 to vector<8x128xf32>
    %127 = arith.addf %125, %126 : vector<8x128xf32>
    %128 = arith.mulf %127, %22 : vector<8x128xf32>
    %cst_43 = arith.constant 1.960000e+03 : f32
    %129 = vector.broadcast %cst_43 : f32 to vector<8x128xf32>
    %130 = arith.addf %128, %129 : vector<8x128xf32>
    %131 = arith.mulf %130, %22 : vector<8x128xf32>
    %cst_44 = arith.constant 6.769000e+03 : f32
    %132 = vector.broadcast %cst_44 : f32 to vector<8x128xf32>
    %133 = arith.addf %131, %132 : vector<8x128xf32>
    %134 = arith.mulf %133, %22 : vector<8x128xf32>
    %cst_45 = arith.constant 1.313200e+04 : f32
    %135 = vector.broadcast %cst_45 : f32 to vector<8x128xf32>
    %136 = arith.addf %134, %135 : vector<8x128xf32>
    %137 = arith.mulf %136, %22 : vector<8x128xf32>
    %cst_46 = arith.constant 1.306800e+04 : f32
    %138 = vector.broadcast %cst_46 : f32 to vector<8x128xf32>
    %139 = arith.addf %137, %138 : vector<8x128xf32>
    %140 = arith.mulf %139, %22 : vector<8x128xf32>
    %cst_47 = arith.constant 5.040000e+03 : f32
    %141 = vector.broadcast %cst_47 : f32 to vector<8x128xf32>
    %142 = arith.addf %140, %141 : vector<8x128xf32>
    %143 = arith.mulf %142, %22 : vector<8x128xf32>
    %cst_48 = arith.constant 0.000000e+00 : f32
    %144 = vector.broadcast %cst_48 : f32 to vector<8x128xf32>
    %145 = arith.addf %143, %144 : vector<8x128xf32>
    %146 = arith.divf %120, %145 : vector<8x128xf32>
    %cst_49 = arith.constant 1.000000e+00 : f32
    %147 = vector.broadcast %cst_49 : f32 to vector<8x128xf32>
    %148 = arith.mulf %19, %147 : vector<8x128xf32>
    %cst_50 = arith.constant 52.4583321 : f32
    %149 = vector.broadcast %cst_50 : f32 to vector<8x128xf32>
    %150 = arith.addf %148, %149 : vector<8x128xf32>
    %151 = arith.mulf %150, %19 : vector<8x128xf32>
    %cst_51 = arith.constant 1203.83423 : f32
    %152 = vector.broadcast %cst_51 : f32 to vector<8x128xf32>
    %153 = arith.addf %151, %152 : vector<8x128xf32>
    %154 = arith.mulf %153, %19 : vector<8x128xf32>
    %cst_52 = arith.constant 15784.8809 : f32
    %155 = vector.broadcast %cst_52 : f32 to vector<8x128xf32>
    %156 = arith.addf %154, %155 : vector<8x128xf32>
    %157 = arith.mulf %156, %19 : vector<8x128xf32>
    %cst_53 = arith.constant 129347.258 : f32
    %158 = vector.broadcast %cst_53 : f32 to vector<8x128xf32>
    %159 = arith.addf %157, %158 : vector<8x128xf32>
    %160 = arith.mulf %159, %19 : vector<8x128xf32>
    %cst_54 = arith.constant 678289.688 : f32
    %161 = vector.broadcast %cst_54 : f32 to vector<8x128xf32>
    %162 = arith.addf %160, %161 : vector<8x128xf32>
    %163 = arith.mulf %162, %19 : vector<8x128xf32>
    %cst_55 = arith.constant 2222880.5 : f32
    %164 = vector.broadcast %cst_55 : f32 to vector<8x128xf32>
    %165 = arith.addf %163, %164 : vector<8x128xf32>
    %166 = arith.mulf %165, %19 : vector<8x128xf32>
    %cst_56 = arith.constant 0x4A7E0D50 : f32
    %167 = vector.broadcast %cst_56 : f32 to vector<8x128xf32>
    %168 = arith.addf %166, %167 : vector<8x128xf32>
    %169 = arith.mulf %168, %19 : vector<8x128xf32>
    %cst_57 = arith.constant 3409662.75 : f32
    %170 = vector.broadcast %cst_57 : f32 to vector<8x128xf32>
    %171 = arith.addf %169, %170 : vector<8x128xf32>
    %cst_58 = arith.constant 1.000000e+00 : f32
    %172 = vector.broadcast %cst_58 : f32 to vector<8x128xf32>
    %173 = arith.mulf %19, %172 : vector<8x128xf32>
    %cst_59 = arith.constant 2.800000e+01 : f32
    %174 = vector.broadcast %cst_59 : f32 to vector<8x128xf32>
    %175 = arith.addf %173, %174 : vector<8x128xf32>
    %176 = arith.mulf %175, %19 : vector<8x128xf32>
    %cst_60 = arith.constant 3.220000e+02 : f32
    %177 = vector.broadcast %cst_60 : f32 to vector<8x128xf32>
    %178 = arith.addf %176, %177 : vector<8x128xf32>
    %179 = arith.mulf %178, %19 : vector<8x128xf32>
    %cst_61 = arith.constant 1.960000e+03 : f32
    %180 = vector.broadcast %cst_61 : f32 to vector<8x128xf32>
    %181 = arith.addf %179, %180 : vector<8x128xf32>
    %182 = arith.mulf %181, %19 : vector<8x128xf32>
    %cst_62 = arith.constant 6.769000e+03 : f32
    %183 = vector.broadcast %cst_62 : f32 to vector<8x128xf32>
    %184 = arith.addf %182, %183 : vector<8x128xf32>
    %185 = arith.mulf %184, %19 : vector<8x128xf32>
    %cst_63 = arith.constant 1.313200e+04 : f32
    %186 = vector.broadcast %cst_63 : f32 to vector<8x128xf32>
    %187 = arith.addf %185, %186 : vector<8x128xf32>
    %188 = arith.mulf %187, %19 : vector<8x128xf32>
    %cst_64 = arith.constant 1.306800e+04 : f32
    %189 = vector.broadcast %cst_64 : f32 to vector<8x128xf32>
    %190 = arith.addf %188, %189 : vector<8x128xf32>
    %191 = arith.mulf %190, %19 : vector<8x128xf32>
    %cst_65 = arith.constant 5.040000e+03 : f32
    %192 = vector.broadcast %cst_65 : f32 to vector<8x128xf32>
    %193 = arith.addf %191, %192 : vector<8x128xf32>
    %194 = arith.mulf %193, %19 : vector<8x128xf32>
    %cst_66 = arith.constant 0.000000e+00 : f32
    %195 = vector.broadcast %cst_66 : f32 to vector<8x128xf32>
    %196 = arith.addf %194, %195 : vector<8x128xf32>
    %197 = arith.divf %171, %196 : vector<8x128xf32>
    %198 = arith.mulf %146, %197 : vector<8x128xf32>
    %199 = arith.divf %95, %198 : vector<8x128xf32>
    %200 = math.log %199 : vector<8x128xf32>
    %201 = arith.addf %44, %200 : vector<8x128xf32>
    %cst_67 = arith.constant 1.000000e+00 : f32
    %202 = vector.broadcast %cst_67 : f32 to vector<8x128xf32>
    %203 = arith.subf %202, %14 : vector<8x128xf32>
    %204 = math.log %203 : vector<8x128xf32>
    %205 = arith.mulf %8, %204 : vector<8x128xf32>
    %206 = arith.addf %201, %205 : vector<8x128xf32>
    %207 = math.log %14 : vector<8x128xf32>
    %208 = arith.mulf %19, %207 : vector<8x128xf32>
    %209 = arith.addf %206, %208 : vector<8x128xf32>
    %cst_68 = arith.constant 0.000000e+00 : f32
    %210 = vector.broadcast %cst_68 : f32 to vector<8x128xf32>
    %211 = arith.subf %210, %209 : vector<8x128xf32>
    %212 = arith.addf %0, %211 : vector<8x128xf32>
    %c1_i32 = arith.constant 1 : i32
    %c0_69 = arith.constant 0 : index
    %c0_70 = arith.constant 0 : index
    %213 = vector.load %arg4[%c0_69, %c0_70] : memref<8x128xf32, #tpu.memory_space<vmem>>, vector<8x128xf32>
    tpu.vector_store %arg4[%c0_69, %c0_70], %212 {strides = array<i32>} : memref<8x128xf32, #tpu.memory_space<vmem>>, vector<8x128xf32>,
    return
  }
  func.func @transform_0(%arg0: i32) -> (i32, i32) {
    %c0_i32 = arith.constant 0 : i32
    %c0_i32_0 = arith.constant 0 : i32
    return %arg0, %c0_i32 : i32, i32
  }
  func.func @transform_1(%arg0: i32) -> (i32, i32) {
    %c0_i32 = arith.constant 0 : i32
    %c0_i32_0 = arith.constant 0 : i32
    return %arg0, %c0_i32 : i32, i32
  }
  func.func @transform_2(%arg0: i32) -> (i32, i32) {
    %c0_i32 = arith.constant 0 : i32
    %c0_i32_0 = arith.constant 0 : i32
    return %arg0, %c0_i32 : i32, i32
  }
  func.func @transform_3(%arg0: i32) -> (i32, i32) {
    %c0_i32 = arith.constant 0 : i32
    %c0_i32_0 = arith.constant 0 : i32
    return %arg0, %c0_i32 : i32, i32
  }
}

</mosaic_0001>

<bundles_post_ra>
// kernel: tpu_custom_call.1
= control target key start
LH: loop header
LB: loop body
LE: loop exit
PB: predicated region body
PF: predicated region fallthrough
CT: control target
= control target key end

     0   :  { %s1189_s0 = inlined_call_operand.hbm [shape: f32[16,128], index: 0, kind: input, shape index: {}]   ;;  %s1190_s1 = inlined_call_operand.hbm [shape: f32[16,128], index: 1, kind: input, shape index: {}]   ;;  %s1191_s2 = inlined_call_operand.hbm [shape: f32[16,128], index: 2, kind: input, shape index: {}]   ;;  %s1192_s3 = inlined_call_operand.hbm [shape: f32[16,128], index: 3, kind: output, shape index: {}]  }
   0x1   :  { %1193 = sst [smem:[#allocation13_spill]] %s1190_s1 }
   0x2   :  { %8 = vsyncpa [#allocation3], 0 }
   0x3   :  { %10 = vsyncpa [#allocation3 + $0x1], 0 }
   0x4   :  { %11 = vsyncpa [#allocation6], 0 }
   0x5   :  { %13 = vsyncpa [#allocation6 + $0x1], 0 }
   0x6   :  { %14 = vsyncpa [#allocation4], 0 }
   0x7   :  { %16 = vsyncpa [#allocation4 + $0x1], 0  ;;  %s900_s12 = smov 0   ;;  %s902_s13 = smov 0  }
   0x8   :  { %s904_s14 = smov 0   ;;  %s906_s15 = smov 0  }
   0x9 LB: > { %s921_s16 = sadd.s32 4294967295, %s878_s15   ;;  %s617_s17 = sadd.s32 4294967294, %s878_s15   ;;  %s878_s15 = sphi %s906_s15, %s1209_s15   ;;  %s874_s14 = sphi %s904_s14, %s1208_s14   ;;  %s870_s13 = sphi %s902_s13, %s1207_s13   ;;  %s866_s12 = sphi %s900_s12, %s1206_s12  }
   0xa   : > { %s925_s18 = sadd.s32 1, %s878_s15   ;;  %s29_s19 = sadd.s32 1, %s874_s14 }
   0xb   : > { %s26_s20 = ssub.s32 %s878_s15, %s925_s18  ;;  %p36_p0 = scmp.ne.s32.totalorder %s874_s14, %s870_s13 }
   0xc   : > { %p27_p1 = scmp.eq.s32.totalorder %s26_s20, 0  ;;  %p37_p2 = scmp.eq.s32.totalorder %s878_s15, 0 }
   0xd   : > { %p42_p3 = scmp.ne.s32.totalorder %s870_s13, %s866_s12  ;;  %p43_p4 = scmp.eq.s32.totalorder %s921_s16, 0 }
   0xe   : > { %s937_s21 = scalar_select %p27_p1, %s874_s14, %s29_s19  }
   0xf   : > { %p38_p5 = por %p37_p2, %p36_p0  ;;  %p939_p6 = por %p43_p4, %p42_p3 }
  0x10   : > { %1194 = sst [smem:[#allocation12_spill]] %s937_s21  ;;  %p118_p7 = scmp.eq.s32.totalorder %s921_s16, 1 }
  0x11   : > { %p124_p8 = scmp.eq.s32.totalorder %s617_s17, 1  ;;  %p619_p9 = scmp.ge.s32.totalorder %s878_s15, 2 }
  0x12   : > { %p660_p10 = scmp.lt.s32.totalorder %s878_s15, 2  ;;  %p946_p11 = por %p118_p7, %p36_p0 }
  0x13   : > { %p950_p12 = por %p124_p8, %p42_p3  ;;  %s144_s25 = sand.u32 1, %s874_s14  }
  0x14   : > { %s956_s26 = sshll.u32 %s878_s15, 3  ;;  %s960_s27 = sshll.u32 %s144_s25, 3 }
  0x15   : > { %p962_p13 = pnand %p660_p10, %p38_p5  ;;  %s163_s29 = sand.u32 1, %s878_s15  }
  0x16   : > { %s1199_s1 = sld [smem:[#allocation13_spill]]  ;;  %s167_s6 = scalar_lea.vmem [#allocation5], %s960_s27 }
  0x17   : > { %s175_s7 = sshll.u32 %s167_s6, 4  ;;  %p626_p0 = scmp.ge.s32.totalorder %s878_s15, 1  ;;  %s176_s7 = int_to_ptr.vmem [resolvable:$true] %s175_s7 }
  0x18   : > { %s973_s9 = scalar_lea.sflag [#allocation6], %s163_s29  ;;  %p722_p2 = pneg %p962_p13 }
  0x1c   : > { %s171_s5 = scalar_lea.hbm %s1199_s1, %s956_s26  ;;  %s725_s20 = scalar_lea.hbm %s1199_s1, 16 }
  0x1d   : > { %s173_s8 = sshll.u32 %s171_s5, 4  ;;  %s174_s8 = int_to_ptr.hbm [resolvable:$true] %s173_s8 }
  0x1e   : > { %s718_s10 = sshra.s32 %s174_s8, 4  ;;  %s719_s10 = int_to_ptr.hbm [resolvable:$true] %s718_s10 }
  0x1f   : > { %s720_s11 = scalar_lea.hbm %s719_s10, 8  ;;  %p726_p5 = scmp.lt.s32.totalorder %s719_s10, %s1199_s1 }
  0x20   : > { %p721_p1 = scmp.ne.s32.totalorder %s719_s10, %s720_s11  ;;  %p727_p7 = scmp.lt.s32.totalorder %s725_s20, %s720_s11 }
  0x22   : > { %p723_p3 = pnand %p722_p2, %p721_p1  ;;  %p728_p8 = por %p727_p7, %p726_p5 }
  0x24   : > { %p724_p4 = pneg %p723_p3 }
  0x26   : > { %p729_p10 = pnand %p728_p8, %p724_p4 }
  0x28   : > { %732 = shalt.err (!%p729_p10)
}
  0x29   : > { %652 = dma.hbm_to_vmem [thread:$0]  (!%p962_p13), %s174_s8, 128, %s176_s7, %s973_s9  }
  0x2a   : > { %p199_p1 = scmp.lt.s32.totalorder %s878_s15, 3  ;;  %s152_s6 = scalar_lea.hbm %s1189_s0, %s956_s26 }
  0x2b   : > { %s154_s11 = sshll.u32 %s152_s6, 4  ;;  %s148_s17 = scalar_lea.vmem [#allocation2], %s960_s27  ;;  %s155_s11 = int_to_ptr.hbm [resolvable:$true] %s154_s11 }
  0x2c   : > { %p996_p3 = pnand %p626_p0, %p199_p1  ;;  %s156_s19 = sshll.u32 %s148_s17, 4  ;;  %s157_s19 = int_to_ptr.vmem [resolvable:$true] %s156_s19 }
  0x2d   : > { %s145_s20 = scalar_lea.sflag [#allocation3], %s144_s25  ;;  %s748_s30 = sshra.s32 %s155_s11, 4  ;;  %s749_s30 = int_to_ptr.hbm [resolvable:$true] %s748_s30 }
  0x2e   : > { %s750_s7 = scalar_lea.hbm %s749_s30, 8  ;;  %s755_s29 = scalar_lea.hbm %s1189_s0, 16 }
  0x2f   : > { %p751_p4 = scmp.ne.s32.totalorder %s749_s30, %s750_s7  ;;  %p756_p0 = scmp.lt.s32.totalorder %s749_s30, %s1189_s0 }
  0x30   : > { %p757_p8 = scmp.lt.s32.totalorder %s755_s29, %s750_s7 }
  0x31   : > { %p753_p5 = pnand %p751_p4, %p722_p2 }
  0x32   : > { %p758_p10 = por %p757_p8, %p756_p0 }
  0x33   : > { %p754_p7 = pneg %p753_p5 }
  0x35   : > { %p759_p1 = pnand %p758_p10, %p754_p7 }
  0x37   : > { %762 = shalt.err (!%p759_p1)
}
  0x38   : > { %649 = dma.hbm_to_vmem [thread:$0]  (!%p962_p13), %s155_s11, 128, %s157_s19, %s145_s20  }
  0x39   : > { %s190_s1 = scalar_lea.hbm %s1191_s2, %s956_s26  ;;  %s186_s8 = scalar_lea.vmem [#allocation7], %s960_s27 }
  0x3a   : > { %s194_s4 = sshll.u32 %s186_s8, 4  ;;  %s192_s21 = sshll.u32 %s190_s1, 4  ;;  %s195_s4 = int_to_ptr.vmem [resolvable:$true] %s194_s4  ;;  %s193_s21 = int_to_ptr.hbm [resolvable:$true] %s192_s21 }
  0x3b   : > { %s778_s30 = sshra.s32 %s193_s21, 4  ;;  %s785_s11 = scalar_lea.hbm %s1191_s2, 16  ;;  %s779_s30 = int_to_ptr.hbm [resolvable:$true] %s778_s30 }
  0x3c   : > { %s780_s7 = scalar_lea.hbm %s779_s30, 8  ;;  %p786_p0 = scmp.lt.s32.totalorder %s779_s30, %s1191_s2 }
  0x3d   : > { %p781_p4 = scmp.ne.s32.totalorder %s779_s30, %s780_s7  ;;  %p787_p8 = scmp.lt.s32.totalorder %s785_s11, %s780_s7 }
  0x3f   : > { %p783_p5 = pnand %p781_p4, %p722_p2  ;;  %p788_p10 = por %p787_p8, %p786_p0 }
  0x41   : > { %p784_p7 = pneg %p783_p5 }
  0x43   : > { %p789_p1 = pnand %p788_p10, %p784_p7 }
  0x45   : > { %792 = shalt.err (!%p789_p1)
}
  0x46   : > { %655 = dma.hbm_to_vmem [thread:$0]  (!%p962_p13), %s193_s21, 128, %s195_s4, %s973_s9  }
  0x47   : > { %203 = sbr.rel (%p996_p3) target bundleno = 197 (0xc5), region = 32  ;;  %s1034_s1 = sand.u32 (!%p996_p3), 1, %s870_s13  }
  0x48   : > { %s1037_s26 = sshll.u32 (!%p996_p3), %s1034_s1, 3  ;;  %s206_s27 = scalar_lea.sflag (!%p996_p3), [#allocation3], %s1034_s1 }
  0x49   : > { %s209_s6 = scalar_lea.vmem (!%p996_p3), [#allocation2], %s1037_s26 }
  0x4c   : > { %853 = dma.done.wait (%p939_p6), %s206_s27, 128  }
  0x4d   : > { %855 = vsyncadd (%p939_p6), %s206_s27, 4294967168  ;;  %s215_s21 = sand.u32 1, %s921_s16   ;;  %s219_s9 = scalar_lea.vmem [#allocation5], %s1037_s26 }
  0x4e   : > { %s216_s28 = scalar_lea.sflag [#allocation6], %s215_s21 }
  0x4f   : > { %857 = dma.done.wait (%p939_p6), %s216_s28, 256  }
  0x50   : > { %859 = vsyncadd (%p939_p6), %s216_s28, 4294967040  ;;  %v264_v0 = vld [vmem:[%s219_s9] sm:$0xff]  ;;  %s229_s10 = scalar_lea.vmem [#allocation7], %s1037_s26  ;;  %v263_v4 = vld [vmem:[%s209_s6] sm:$0xff]  ;;  %s635_s22 = sshll.u32 %s921_s16, 3 }
  0x51   : > { %v1052_v1 = vld [vmem:[%s229_s10] sm:$0xff]  ;;  %v266_v2 = vmul.f32 %v264_v0, %v264_v0  ;;  %v284_v32 = vmul.f32 %v263_v4, %v263_v4  ;;  %s499_s8 = scalar_lea.hbm %s1192_s3, %s635_s22  ;;  %s262_s4 = scalar_lea.vmem [#allocation8], %s1037_s26 }
  0x52   : > { %v1055_v3 = vadd.f32 1.0, %v1052_v1  ;;  %s501_s30 = sshll.u32 %s262_s4, 4  ;;  %s503_s7 = sshll.u32 %s499_s8, 4  ;;  %s502_s30 = int_to_ptr.vmem [resolvable:$true] %s501_s30  ;;  %s504_s7 = int_to_ptr.hbm [resolvable:$true] %s503_s7 }
  0x53   : > { %v267_v5 = vadd.f32 2e-06, %v266_v2  ;;  %s489_s29 = scalar_lea.sflag [#allocation4], %s1034_s1  ;;  %s822_s16 = sshra.s32 %s504_s7, 4  ;;  %s823_s16 = int_to_ptr.hbm [resolvable:$true] %s822_s16 }
  0x54   : > { %v382_v6 = vadd.f32 28.0, %v1055_v3  ;;  %v367_v19 = vadd.f32 52.458332, %v1055_v3  ;;  %v305_v39 = vadd.f32 6.5, %v1055_v3  ;;  %v632_v0 = vadd.f32 -0.5, %v1055_v3  ;;  %s824_s5 = scalar_lea.hbm %s823_s16, 8  ;;  %p829_p3 = scmp.lt.s32.totalorder %s823_s16, %s1192_s3 }
  0x55   : > { %694 = vrcp.f32 %v267_v5  ;;  %v285_v7 = vsub.f32 %v267_v5, %v263_v4  ;;  %v279_v13 = vand.u32 2147483648, %v267_v5  ;;  %vm273_vm0 = vweird.f32 %v267_v5  ;;  %p825_p6 = scmp.ne.s32.totalorder %s823_s16, %s824_s5  ;;  %s828_s20 = scalar_lea.hbm %s1192_s3, 16 }
  0x56   : > { %v383_v8 = vmul.f32 %v382_v6, %v1055_v3  ;;  %v277_v17 = vand.u32 2147483647, %v267_v5  ;;  %v368_v29 = vmul.f32 %v367_v19, %v1055_v3  ;;  %p830_p4 = scmp.lt.s32.totalorder %s828_s20, %s824_s5 }
  0x57   : > { %696 = vrcp.f32 %v285_v7  ;;  %v280_v22 = vor.u32 1.1754944e-38, %v279_v13  ;;  %vm291_vm2 = vweird.f32 %v285_v7  ;;  %v297_v23 = vand.u32 2147483648, %v285_v7  ;;  %p826_p13 = pnand %p825_p6, %p946_p11 }
  0x58   : > { %v384_v9 = vadd.f32 322.0, %v383_v8  ;;  %v295_v25 = vand.u32 2147483647, %v285_v7  ;;  %vm278_vm5 = vcmp.eq.f32.partialorder %v277_v17, 8.507059e+37  ;;  %v369_v40 = vadd.f32 1203.8342, %v368_v29  ;;  %p831_p5 = por %p830_p4, %p829_p3 }
  0x59   : > { %v298_v33 = vor.u32 1.1754944e-38, %v297_v23  ;;  %698 = vlog2.f32 %v305_v39  ;;  %p827_p2 = pneg %p826_p13 }
  0x5a   : > { %v385_v11 = vmul.f32 %v384_v9, %v1055_v3  ;;  %vm296_vm7 = vcmp.eq.f32.partialorder %v295_v25, 8.507059e+37  ;;  %v370_v45 = vmul.f32 %v369_v40, %v1055_v3 }
  0x5b   : > { %v695_v10 = vpop.eup %694  ;;  %p832_p7 = pnand %p831_p5, %p827_p2 }
  0x5c   : > { %v269_v12 = vmul.f32 %v695_v10, %v267_v5  ;;  %v386_v14 = vadd.f32 1960.0, %v385_v11  ;;  %vm274_vm1 = vweird.f32 %v695_v10  ;;  %v371_v52 = vadd.f32 15784.881, %v370_v45 }
  0x5d   : > { %v697_v15 = vpop.eup %696  ;;  %vm275_vm3 = vmor %vm273_vm0, %vm274_vm1 }
  0x5e   : > { %v270_v16 = vsub.f32 1.0, %v269_v12  ;;  %v287_v18 = vmul.f32 %v697_v15, %v285_v7  ;;  %v387_v20 = vmul.f32 %v386_v14, %v1055_v3  ;;  %vm292_vm4 = vweird.f32 %v697_v15 }
  0x5f   : > { %vm293_vm6 = vmor %vm291_vm2, %vm292_vm4  ;;  %v699_v56 = vpop.eup %698  ;;  %v372_v61 = vmul.f32 %v371_v52, %v1055_v3 }
  0x60   : > { %v271_v21 = vmul.f32 %v695_v10, %v270_v16  ;;  %v288_v24 = vsub.f32 1.0, %v287_v18  ;;  %v388_v26 = vadd.f32 6769.0, %v387_v20  ;;  %v313_v2 = vmul.f32 0.6931472, %v699_v56 }
  0x61   : > { %v373_v14 = vadd.f32 129347.26, %v372_v61 }
  0x62   : > { %v272_v27 = vadd.f32 %v695_v10, %v271_v21  ;;  %v289_v28 = vmul.f32 %v697_v15, %v288_v24  ;;  %v389_v30 = vmul.f32 %v388_v26, %v1055_v3  ;;  %v314_v18 = vmul.f32 %v632_v0, %v313_v2 }
  0x63   : > { %v374_v26 = vmul.f32 %v373_v14, %v1055_v3 }
  0x64   : > { %v276_v31 = vsel %vm275_vm3, %v695_v10, %v272_v27  ;;  %v290_v35 = vadd.f32 %v697_v15, %v289_v28  ;;  %v390_v36 = vadd.f32 13132.0, %v389_v30 }
  0x65   : > { %v281_v34 = vsel %vm278_vm5, %v280_v22, %v276_v31 }
  0x66   : > { %v1064_v37 = vmul.f32 %v281_v34, %v263_v4  ;;  %v294_v38 = vsel %vm293_vm6, %v697_v15, %v290_v35  ;;  %v391_v41 = vmul.f32 %v390_v36, %v1055_v3 }
  0x67   : > { %v299_v42 = vsel %vm296_vm7, %v298_v33, %v294_v38  ;;  %v375_v38 = vadd.f32 678289.7, %v374_v26 }
  0x68   : > { %v300_v43 = vmul.f32 %v299_v42, %v284_v32  ;;  %v392_v46 = vadd.f32 13068.0, %v391_v41  ;;  %v1131_v14 = vadd.f32 1e-06, %v1064_v37 }
  0x6a   : > { %v1068_v44 = vadd.f32 1e-06, %v300_v43  ;;  %v393_v53 = vmul.f32 %v392_v46, %v1055_v3 }
  0x6c   : > { %v1073_v47 = vadd.f32 %v1068_v44, %v1052_v1  ;;  %v306_v48 = vadd.f32 6.5, %v1068_v44  ;;  %v412_v49 = vadd.f32 52.458332, %v1068_v44  ;;  %v427_v50 = vadd.f32 28.0, %v1068_v44 }
  0x6d   : > { %v394_v62 = vadd.f32 5040.0, %v393_v53  ;;  %v633_v6 = vadd.f32 -0.5, %v1068_v44 }
  0x6e   : > { %v304_v51 = vadd.f32 6.5, %v1073_v47  ;;  %700 = vlog2.f32 %v306_v48  ;;  %v337_v54 = vadd.f32 28.0, %v1073_v47  ;;  %v413_v55 = vmul.f32 %v412_v49, %v1068_v44 }
  0x6f   : > { %v322_v57 = vadd.f32 52.458332, %v1073_v47  ;;  %v428_v58 = vmul.f32 %v427_v50, %v1068_v44  ;;  %v631_v9 = vadd.f32 -0.5, %v1073_v47  ;;  %v1094_v15 = vmul.f32 %v394_v62, %v1055_v3 }
  0x70   : > { %702 = vlog2.f32 %v304_v51  ;;  %v338_v59 = vmul.f32 %v337_v54, %v1073_v47  ;;  %v414_v60 = vadd.f32 1203.8342, %v413_v55  ;;  %v376_v49 = vmul.f32 %v375_v38, %v1055_v3 }
  0x71   : > { %v429_v63 = vadd.f32 322.0, %v428_v58  ;;  %v323_v7 = vmul.f32 %v322_v57, %v1073_v47  ;;  %704 = vrcp.f32 %v1094_v15  ;;  %vm402_vm8 = vweird.f32 %v1094_v15 }
  0x72   : > { %v339_v4 = vadd.f32 322.0, %v338_v59  ;;  %v415_v12 = vmul.f32 %v414_v60, %v1068_v44  ;;  %v377_v57 = vadd.f32 2222880.5, %v376_v49 }
  0x73   : > { %v430_v8 = vmul.f32 %v429_v63, %v1068_v44  ;;  %v324_v21 = vadd.f32 1203.8342, %v323_v7  ;;  %v406_v7 = vand.u32 2147483647, %v1094_v15 }
  0x74   : > { %v701_v5 = vpop.eup %700  ;;  %v340_v11 = vmul.f32 %v339_v4, %v1073_v47  ;;  %v416_v24 = vadd.f32 15784.881, %v415_v12  ;;  %v378_v0 = vmul.f32 %v377_v57, %v1055_v3  ;;  %v476_v57 = vsub.f32 1.0, %v1131_v14 }
  0x75   : > { %v318_v10 = vmul.f32 0.6931472, %v701_v5  ;;  %v431_v16 = vadd.f32 1960.0, %v430_v8  ;;  %v325_v31 = vmul.f32 %v324_v21, %v1073_v47  ;;  %v408_v8 = vand.u32 2147483648, %v1094_v15 }
  0x76   : > { %v703_v13 = vpop.eup %702  ;;  %v341_v19 = vadd.f32 1960.0, %v340_v11  ;;  %v417_v29 = vmul.f32 %v416_v24, %v1068_v44  ;;  %vm1134_vm11 = vcmp.eq.f32.partialorder %v406_v7, 8.507059e+37 }
  0x77   : > { %v309_v17 = vmul.f32 0.6931472, %v703_v13  ;;  %v319_v20 = vmul.f32 %v633_v6, %v318_v10  ;;  %v432_v25 = vmul.f32 %v431_v16, %v1068_v44  ;;  %v705_v41 = vpop.eup %704  ;;  %v326_v42 = vadd.f32 15784.881, %v325_v31 }
  0x78   : > { %v342_v23 = vmul.f32 %v341_v19, %v1073_v47  ;;  %v418_v34 = vadd.f32 129347.26, %v417_v29  ;;  %v398_v52 = vmul.f32 %v705_v41, %v1094_v15  ;;  %vm403_vm9 = vweird.f32 %v705_v41 }
  0x79   : > { %v310_v22 = vmul.f32 %v631_v9, %v309_v17  ;;  %v433_v30 = vadd.f32 6769.0, %v432_v25  ;;  %v327_v51 = vmul.f32 %v326_v42, %v1073_v47  ;;  %v379_v6 = vadd.f32 4162388.0, %v378_v0  ;;  %vm1126_vm10 = vmor %vm402_vm8, %vm403_vm9 }
  0x7a   : > { %v343_v28 = vadd.f32 6769.0, %v342_v23  ;;  %v419_v39 = vmul.f32 %v418_v34, %v1068_v44  ;;  %v399_v60 = vsub.f32 1.0, %v398_v52 }
  0x7b   : > { %v315_v27 = vsub.f32 %v310_v22, %v314_v18  ;;  %v434_v35 = vmul.f32 %v433_v30, %v1068_v44  ;;  %v328_v59 = vadd.f32 129347.26, %v327_v51  ;;  %v380_v16 = vmul.f32 %v379_v6, %v1055_v3 }
  0x7c   : > { %v344_v33 = vmul.f32 %v343_v28, %v1073_v47  ;;  %v420_v45 = vadd.f32 678289.7, %v419_v39  ;;  %v400_v4 = vmul.f32 %v705_v41, %v399_v60  ;;  %v409_v18 = vor.u32 1.1754944e-38, %v408_v8 }
  0x7d   : > { %v1102_v32 = vsub.f32 %v315_v27, %v319_v20  ;;  %v435_v40 = vadd.f32 13132.0, %v434_v35  ;;  %v329_v2 = vmul.f32 %v328_v59, %v1073_v47  ;;  %v381_v3 = vadd.f32 3409662.8, %v380_v16 }
  0x7e   : > { %v345_v36 = vadd.f32 13132.0, %v344_v33  ;;  %v421_v53 = vmul.f32 %v420_v45, %v1068_v44  ;;  %v401_v10 = vadd.f32 %v705_v41, %v400_v4 }
  0x7f   : > { %v436_v46 = vmul.f32 %v435_v40, %v1068_v44  ;;  %v330_v9 = vadd.f32 678289.7, %v329_v2  ;;  %v321_v7 = vadd.f32 6.5810614, %v1102_v32 }
  0x80   : > { %v346_v43 = vmul.f32 %v345_v36, %v1073_v47  ;;  %v422_v61 = vadd.f32 2222880.5, %v421_v53  ;;  %v405_v20 = vsel %vm1126_vm10, %v705_v41, %v401_v10 }
  0x81   : > { %v437_v50 = vadd.f32 13068.0, %v436_v46  ;;  %v331_v15 = vmul.f32 %v330_v9, %v1073_v47  ;;  %v410_v27 = vsel %vm1134_vm11, %v409_v18, %v405_v20 }
  0x82   : > { %v347_v48 = vadd.f32 13068.0, %v346_v43  ;;  %v423_v5 = vmul.f32 %v422_v61, %v1068_v44  ;;  %v411_v33 = vmul.f32 %v410_v27, %v381_v3 }
  0x83   : > { %v438_v55 = vmul.f32 %v437_v50, %v1068_v44  ;;  %v332_v29 = vadd.f32 2222880.5, %v331_v15 }
  0x84   : > { %v348_v54 = vmul.f32 %v347_v48, %v1073_v47  ;;  %v424_v11 = vadd.f32 4162388.0, %v423_v5 }
  0x85   : > { %v439_v58 = vadd.f32 5040.0, %v438_v55  ;;  %v333_v39 = vmul.f32 %v332_v29, %v1073_v47 }
  0x86   : > { %v349_v56 = vadd.f32 5040.0, %v348_v54  ;;  %v425_v21 = vmul.f32 %v424_v11, %v1068_v44 }
  0x87   : > { %v440_v62 = vmul.f32 %v439_v58, %v1068_v44  ;;  %v334_v46 = vadd.f32 4162388.0, %v333_v39 }
  0x88   : > { %v1117_v63 = vmul.f32 %v349_v56, %v1073_v47  ;;  %v426_v30 = vadd.f32 3409662.8, %v425_v21 }
  0x89   : > { %706 = vrcp.f32 %v440_v62  ;;  %v453_v22 = vand.u32 2147483648, %v440_v62  ;;  %vm447_vm12 = vweird.f32 %v440_v62  ;;  %v451_v37 = vand.u32 2147483647, %v440_v62 }
  0x8a   : > { %708 = vrcp.f32 %v1117_v63  ;;  %vm357_vm0 = vweird.f32 %v1117_v63  ;;  %v363_v48 = vand.u32 2147483648, %v1117_v63  ;;  %v361_v50 = vand.u32 2147483647, %v1117_v63 }
  0x8b   : > { %710 = vlog2.f32 %v1131_v14  ;;  %v454_v28 = vor.u32 1.1754944e-38, %v453_v22  ;;  %vm452_vm15 = vcmp.eq.f32.partialorder %v451_v37, 8.507059e+37  ;;  %v335_v51 = vmul.f32 %v334_v46, %v1073_v47 }
  0x8c   : > { %v364_v53 = vor.u32 1.1754944e-38, %v363_v48  ;;  %vm362_vm3 = vcmp.eq.f32.partialorder %v361_v50, 8.507059e+37 }
  0x8f   : > { %v707_v13 = vpop.eup %706 }
  0x90   : > { %v443_v19 = vmul.f32 %v707_v13, %v440_v62  ;;  %v709_v23 = vpop.eup %708  ;;  %vm448_vm13 = vweird.f32 %v707_v13 }
  0x91   : > { %v353_v26 = vmul.f32 %v709_v23, %v1117_v63  ;;  %vm449_vm14 = vmor %vm447_vm12, %vm448_vm13  ;;  %v711_v35 = vpop.eup %710  ;;  %vm358_vm1 = vweird.f32 %v709_v23 }
  0x92   : > { %v444_v24 = vsub.f32 1.0, %v443_v19  ;;  %v482_v41 = vmul.f32 0.6931472, %v711_v35  ;;  %vm359_vm2 = vmor %vm357_vm0, %vm358_vm1 }
  0x93   : > { %v354_v36 = vsub.f32 1.0, %v353_v26 }
  0x94   : > { %v445_v25 = vmul.f32 %v707_v13, %v444_v24  ;;  %v483_v43 = vmul.f32 %v482_v41, %v1068_v44  ;;  %v336_v44 = vadd.f32 3409662.8, %v335_v51 }
  0x95   : > { %v355_v45 = vmul.f32 %v709_v23, %v354_v36 }
  0x96   : > { %v446_v31 = vadd.f32 %v707_v13, %v445_v25 }
  0x97   : > { %v356_v49 = vadd.f32 %v709_v23, %v355_v45 }
  0x98   : > { %v450_v34 = vsel %vm449_vm14, %v707_v13, %v446_v31 }
  0x99   : > { %v455_v38 = vsel %vm452_vm15, %v454_v28, %v450_v34  ;;  %v360_v54 = vsel %vm359_vm2, %v709_v23, %v356_v49 }
  0x9a   : > { %v456_v40 = vmul.f32 %v455_v38, %v426_v30  ;;  %v365_v60 = vsel %vm362_vm3, %v364_v53, %v360_v54 }
  0x9b   : > { %v366_v47 = vmul.f32 %v365_v60, %v336_v44 }
  0x9c   : > { %v457_v42 = vmul.f32 %v456_v40, %v411_v33 }
  0x9e   : > { %712 = vrcp.f32 %v457_v42  ;;  %v469_v56 = vand.u32 2147483648, %v457_v42  ;;  %vm463_vm4 = vweird.f32 %v457_v42  ;;  %v467_v59 = vand.u32 2147483647, %v457_v42 }
  0x9f   : > { %714 = vlog2.f32 %v476_v57 }
  0xa0   : > { %v470_v62 = vor.u32 1.1754944e-38, %v469_v56  ;;  %vm468_vm7 = vcmp.eq.f32.partialorder %v467_v59, 8.507059e+37 }
  0xa4   : > { %v713_v52 = vpop.eup %712 }
  0xa5   : > { %v459_v55 = vmul.f32 %v713_v52, %v457_v42  ;;  %vm464_vm5 = vweird.f32 %v713_v52  ;;  %v715_v5 = vpop.eup %714 }
  0xa6   : > { %vm465_vm6 = vmor %vm463_vm4, %vm464_vm5  ;;  %v478_v6 = vmul.f32 0.6931472, %v715_v5 }
  0xa7   : > { %v460_v58 = vsub.f32 1.0, %v459_v55 }
  0xa8   : > { %v479_v10 = vmul.f32 %v478_v6, %v1052_v1 }
  0xa9   : > { %v461_v61 = vmul.f32 %v713_v52, %v460_v58 }
  0xab   : > { %v462_v63 = vadd.f32 %v713_v52, %v461_v61 }
  0xad   : > { %v466_v0 = vsel %vm465_vm6, %v713_v52, %v462_v63 }
  0xae   : > { %v471_v2 = vsel %vm468_vm7, %v470_v62, %v466_v0 }
  0xaf   : > { %v472_v4 = vmul.f32 %v471_v2, %v366_v47 }
  0xb1   : > { %716 = vlog2.f32 %v472_v4 }
  0xb7   : > { %v717_v8 = vpop.eup %716 }
  0xb8   : > { %v474_v9 = vmul.f32 0.6931472, %v717_v8 }
  0xba   : > { %v475_v11 = vadd.f32 %v474_v9, %v321_v7 }
  0xbc   : > { %v480_v12 = vadd.f32 %v479_v10, %v475_v11 }
  0xbe   : > { %v484_v13 = vadd.f32 %v483_v43, %v480_v12 }
  0xc0   : > { %v485_v14 = vsub.f32 0.0, %v484_v13 }
  0xc2   : > { %487 = vst [vmem:[%s262_s4] sm:$0xff] %v485_v14 }
  0xc3   : > { %835 = shalt.err (!%p832_p7)
}
  0xc4   : > { %644 = dma.vmem_to_hbm [thread:$0]  (%p946_p11), %s502_s30, 128, %s504_s7, %s489_s29  }
  0xc5 PF: > { %s515_s1 = sand.u32 1, %s866_s12   ;;  %p657_p0 = pnand %p619_p9, %p950_p12 }
  0xc6   : > { %s516_s6 = scalar_lea.sflag [#allocation4], %s515_s1 }
  0xc7   : > { %p658_p8 = pneg %p657_p0 }
  0xc9   : > { %861 = dma.done.wait (%p658_p8), %s516_s6, 128  }
  0xca   : > { %863 = vsyncadd (%p658_p8), %s516_s6, 4294967168  ;;  %s1205_s21 = sld [smem:[#allocation12_spill]]  ;;  %p19_p10 = scmp.ge.s32.totalorder %s925_s18, 4  }
  0xcb   : > { %s1206_s12 = smov %s870_s13  ;;  %s1207_s13 = smov %s874_s14 }
  0xcc   : > { %s1209_s15 = smov %s925_s18  ;;  %21 = sbr.rel (!%p19_p10) target bundleno = 9 (0x9), region = 101 }
  0xd0   : > { %s1208_s14 = smov %s1205_s21 }
  0xd1   :  { %522 = vsyncpa [#allocation3], 1 }
  0xd2   :  { %524 = vsyncpa [#allocation3 + $0x1], 1 }
  0xd3   :  { %525 = vsyncpa [#allocation6], 1 }
  0xd4   :  { %527 = vsyncpa [#allocation6 + $0x1], 1 }
  0xd5   :  { %528 = vsyncpa [#allocation4], 1 }
  0xd6   :  { %530 = vsyncpa [#allocation4 + $0x1], 1 }

</bundles_post_ra>
